<compile_context>
chip_gen: v7x
topology: tpu7x:2x2x1
jax: 0.10.0
libtpu: 0.0.40
codegen_flags: <defaults>
</compile_context>

<pallas_src>
import functools

import jax
import jax.numpy as jnp
from jax import lax
from jax.experimental import pallas as pl
from jax.experimental.pallas import tpu as pltpu


def _bottleneck_kernel(x_ref, s1_ref, b1_ref, w1_ref, s2_ref, b2_ref, w2_ref,
                       out_ref, pad_ref, col_ref, *, H, W, pad_lanes):
    """One batch element per grid step, channel-major (C, H*W) layout.

    x_ref   : (1, Cin, H*W)    f32   input (NCHW with H,W flattened)
    s1/b1   : (Cin, 1)         f32   folded BN1 scale / bias
    w1_ref  : (inter, Cin)     bf16  1x1 conv weight
    s2/b2   : (inter, 1)       f32   folded BN2 scale / bias
    w2_ref  : (Cout, 9*inter)  bf16  3x3 conv weight, im2col layout
    out_ref : (1, Cout, H*W)   f32   only the Cout new channels
    pad_ref : (inter, 2*pad_lanes + H*W) bf16  lane-padded activation scratch
    col_ref : (9*inter, H*W)   bf16  im2col operand scratch
    """
    HW = H * W
    inter = pad_ref.shape[0]

    # --- BN1 (folded) + ReLU -> conv1 (1x1) as one MXU matmul ---------------
    x = x_ref[0]                                                  # (Cin, HW)
    a1 = jnp.maximum(x * s1_ref[...] + b1_ref[...], 0.0)
    h1 = jnp.dot(w1_ref[...], a1.astype(jnp.bfloat16),
                 preferred_element_type=jnp.float32)              # (inter, HW)

    # --- BN2 (folded) + ReLU -------------------------------------------------
    a2 = jnp.maximum(h1 * s2_ref[...] + b2_ref[...], 0.0)
    a2 = a2.astype(jnp.bfloat16)                                  # (inter, HW)

    # --- conv2: 3x3, stride 1, pad 1 as ONE im2col matmul --------------------
    # Lane-padded flat copy [zeros | a2 | zeros]: the zero halo supplies the
    # h-direction padding of the conv; the w-direction wrap across row
    # boundaries is removed with lane masks below.  Only the (lane-aligned)
    # halo stripes are re-zeroed each step, so the kernel stays correct even
    # when the batch grid axis is split across TensorCores.
    zeros_halo = jnp.zeros((inter, pad_lanes), jnp.bfloat16)
    pad_ref[:, :pad_lanes] = zeros_halo
    pad_ref[:, pad_lanes + HW:] = zeros_halo
    pad_ref[:, pad_lanes:pad_lanes + HW] = a2                     # aligned vst

    lane = lax.broadcasted_iota(jnp.int32, (1, HW), 1)
    ww = lane % W                                                 # w coordinate

    for dh in (-1, 0, 1):
        for dw in (-1, 0, 1):
            tap_idx = (dh + 1) * 3 + (dw + 1)
            start = pad_lanes + dh * W + dw
            tap = pad_ref[:, start:start + HW]                    # (inter, HW)
            if dw != 0:
                valid = (ww + dw >= 0) & (ww + dw < W)
                tap = jnp.where(valid, tap, jnp.zeros_like(tap))
            col_ref[tap_idx * inter:(tap_idx + 1) * inter, :] = tap

    acc = jnp.dot(w2_ref[...], col_ref[...],
                  preferred_element_type=jnp.float32)             # (Cout, HW)
    out_ref[0] = acc.astype(out_ref.dtype)


def _forward(x_nchw, s1, b1, w1, s2, b2, w2):
    """x: (N, Cin, H, W) f32; w1: (inter, Cin); w2: (Cout, inter, 3, 3)."""
    N, Cin, H, W = x_nchw.shape
    inter = w1.shape[0]
    Cout = w2.shape[0]
    HW = H * W
    pad_lanes = ((W + 1 + 127) // 128) * 128      # lane-aligned halo >= W+1

    x_flat = x_nchw.reshape(N, Cin, HW)           # free: NCHW is channel-major

    # im2col weight layout: w2_col[o, (kh*3 + kw)*inter + i] = w2[o, i, kh, kw]
    w2_col = jnp.transpose(w2, (0, 2, 3, 1)).reshape(Cout, 9 * inter)

    new_flat = pl.pallas_call(
        functools.partial(_bottleneck_kernel, H=H, W=W, pad_lanes=pad_lanes),
        out_shape=jax.ShapeDtypeStruct((N, Cout, HW), jnp.float32),
        grid=(N,),
        in_specs=[
            pl.BlockSpec((1, Cin, HW), lambda n: (n, 0, 0)),
            pl.BlockSpec((Cin, 1), lambda n: (0, 0)),
            pl.BlockSpec((Cin, 1), lambda n: (0, 0)),
            pl.BlockSpec((inter, Cin), lambda n: (0, 0)),
            pl.BlockSpec((inter, 1), lambda n: (0, 0)),
            pl.BlockSpec((inter, 1), lambda n: (0, 0)),
            pl.BlockSpec((Cout, 9 * inter), lambda n: (0, 0)),
        ],
        out_specs=pl.BlockSpec((1, Cout, HW), lambda n: (n, 0, 0)),
        scratch_shapes=[
            pltpu.VMEM((inter, 2 * pad_lanes + HW), jnp.bfloat16),
            pltpu.VMEM((9 * inter, HW), jnp.bfloat16),
        ],
        compiler_params=pltpu.CompilerParams(
            dimension_semantics=("parallel",)),
    )(x_flat,
      s1.reshape(Cin, 1), b1.reshape(Cin, 1), w1.astype(jnp.bfloat16),
      s2.reshape(inter, 1), b2.reshape(inter, 1),
      w2_col.astype(jnp.bfloat16))

    # torch.cat([x, out], dim=1) — done by XLA so the kernel never re-writes
    # the passthrough channels (halves HBM writeback vs. concat-in-kernel).
    return jnp.concatenate([x_nchw, new_flat.reshape(N, Cout, H, W)], axis=1)


_forward_jit = jax.jit(_forward)


def bottleneck_block(x_nchw, s1, b1, w1, s2, b2, w2, droprate=0.0):
    """BottleneckBlock forward: (N, Cin, H, W) f32 -> (N, Cin+Cout, H, W) f32."""
    if droprate != 0.0:
        # TODO(synk): dropout path (droprate > 0) not implemented in the kernel.
        raise NotImplementedError("droprate > 0 is not supported")
    return _forward_jit(x_nchw, s1, b1, w1, s2, b2, w2)


def reference(x, s1, b1, w1, s2, b2, w2):
    """Pure-JAX reference of the same forward.

    Matmul operands are rounded through bf16 (exactly like the kernel's MXU
    inputs) but the math itself runs in f32, so kernel vs. reference only
    differs by accumulation order.
    """
    bf = lambda a: a.astype(jnp.bfloat16).astype(jnp.float32)
    a1 = jnp.maximum(x * s1[None, :, None, None] + b1[None, :, None, None], 0.0)
    h1 = jnp.einsum('oc,nchw->nohw', bf(w1), bf(a1))
    a2 = jnp.maximum(h1 * s2[None, :, None, None] + b2[None, :, None, None], 0.0)
    h2 = lax.conv_general_dilated(
        bf(a2), bf(w2), window_strides=(1, 1), padding='SAME',
        dimension_numbers=('NCHW', 'OIHW', 'NCHW'))
    return jnp.concatenate([x, h2], axis=1)


if __name__ == "__main__":
    # Small shapes consistent with the module: batch=2, in_channels=4,
    # output_channels=4 (=> inter_planes=16), spatial=16x16.
    N, Cin, H, W = 2, 4, 16, 16
    Cout = 4
    inter = Cout * 4
    eps = 1e-5

    key = jax.random.PRNGKey(0)
    keys = jax.random.split(key, 11)

    x = jax.random.normal(keys[0], (N, Cin, H, W), jnp.float32)

    # Conv weights (PyTorch conv1: (inter, Cin, 1, 1) squeezed to (inter, Cin);
    #               conv2 kept in torch OIHW layout (Cout, inter, 3, 3)).
    w1 = jax.random.normal(keys[1], (inter, Cin), jnp.float32) * 0.2
    w2 = jax.random.normal(keys[2], (Cout, inter, 3, 3), jnp.float32) * 0.1

    # BatchNorm params (inference mode), folded into per-channel scale/bias.
    g1 = 1.0 + 0.1 * jax.random.normal(keys[3], (Cin,), jnp.float32)
    beta1 = 0.1 * jax.random.normal(keys[4], (Cin,), jnp.float32)
    mean1 = 0.1 * jax.random.normal(keys[5], (Cin,), jnp.float32)
    var1 = jnp.abs(1.0 + 0.1 * jax.random.normal(keys[6], (Cin,), jnp.float32))

    g2 = 1.0 + 0.1 * jax.random.normal(keys[7], (inter,), jnp.float32)
    beta2 = 0.1 * jax.random.normal(keys[8], (inter,), jnp.float32)
    mean2 = 0.1 * jax.random.normal(keys[9], (inter,), jnp.float32)
    var2 = jnp.abs(1.0 + 0.1 * jax.random.normal(keys[10], (inter,), jnp.float32))

    s1 = g1 / jnp.sqrt(var1 + eps)
    b1 = beta1 - mean1 * s1
    s2 = g2 / jnp.sqrt(var2 + eps)
    b2 = beta2 - mean2 * s2

    out = jax.block_until_ready(bottleneck_block(x, s1, b1, w1, s2, b2, w2))
    ref = jax.block_until_ready(reference(x, s1, b1, w1, s2, b2, w2))

    assert out.shape == (N, Cin + Cout, H, W), out.shape
    max_err = float(jnp.max(jnp.abs(out - ref)))
    assert jnp.allclose(out, ref, atol=5e-3, rtol=5e-3), max_err

    print("KERNEL_OK")
</pallas_src>

<mosaic_0001>
module attributes {stable_mosaic.version = 11 : i64} {
  func.func @_bottleneck_kernel(%arg0: i32, %arg1: memref<1x4x256xf32, #tpu.memory_space<vmem>>, %arg2: memref<4x1xf32, #tpu.memory_space<vmem>>, %arg3: memref<4x1xf32, #tpu.memory_space<vmem>>, %arg4: memref<16x4xbf16, #tpu.memory_space<vmem>>, %arg5: memref<16x1xf32, #tpu.memory_space<vmem>>, %arg6: memref<16x1xf32, #tpu.memory_space<vmem>>, %arg7: memref<4x144xbf16, #tpu.memory_space<vmem>>, %arg8: memref<1x4x256xf32, #tpu.memory_space<vmem>>, %arg9: memref<16x512xbf16, #tpu.memory_space<vmem>>, %arg10: memref<144x256xbf16, #tpu.memory_space<vmem>>) attributes {dimension_semantics = [#tpu.dimension_semantics<parallel>], iteration_bounds = array<i64: 2>, scalar_prefetch = 0 : i64, scratch_operands = 2 : i64, tpu.core_type = #tpu.core_type<tc>, window_params = [{transform_indices = @transform_0, window_bounds = array<i64: 1, 4, 256>}, {pipeline_mode = #tpu.pipeline_mode<synchronous>, transform_indices = @transform_1, window_bounds = array<i64: 4, 1>}, {pipeline_mode = #tpu.pipeline_mode<synchronous>, transform_indices = @transform_2, window_bounds = array<i64: 4, 1>}, {pipeline_mode = #tpu.pipeline_mode<synchronous>, transform_indices = @transform_3, window_bounds = array<i64: 16, 4>}, {pipeline_mode = #tpu.pipeline_mode<synchronous>, transform_indices = @transform_4, window_bounds = array<i64: 16, 1>}, {pipeline_mode = #tpu.pipeline_mode<synchronous>, transform_indices = @transform_5, window_bounds = array<i64: 16, 1>}, {pipeline_mode = #tpu.pipeline_mode<synchronous>, transform_indices = @transform_6, window_bounds = array<i64: 4, 144>}, {transform_indices = @transform_7, window_bounds = array<i64: 1, 4, 256>}]} {
    %c0 = arith.constant 0 : index
    %c0_0 = arith.constant 0 : index
    %c0_1 = arith.constant 0 : index
    %0 = vector.load %arg1[%c0, %c0_0, %c0_1] : memref<1x4x256xf32, #tpu.memory_space<vmem>>, vector<1x4x256xf32>
    %1 = vector.shape_cast %0 : vector<1x4x256xf32> to vector<4x256xf32>
    %c0_2 = arith.constant 0 : index
    %c0_3 = arith.constant 0 : index
    %2 = vector.load %arg2[%c0_2, %c0_3] : memref<4x1xf32, #tpu.memory_space<vmem>>, vector<4x1xf32>
    %3 = vector.broadcast %2 : vector<4x1xf32> to vector<4x256xf32>
    %4 = arith.mulf %1, %3 : vector<4x256xf32>
    %c0_4 = arith.constant 0 : index
    %c0_5 = arith.constant 0 : index
    %5 = vector.load %arg3[%c0_4, %c0_5] : memref<4x1xf32, #tpu.memory_space<vmem>>, vector<4x1xf32>
    %6 = vector.broadcast %5 : vector<4x1xf32> to vector<4x256xf32>
    %7 = arith.addf %4, %6 : vector<4x256xf32>
    %cst = arith.constant 0.000000e+00 : f32
    %8 = vector.broadcast %cst : f32 to vector<4x256xf32>
    %9 = arith.maximumf %7, %8 : vector<4x256xf32>
    %c0_6 = arith.constant 0 : index
    %c0_7 = arith.constant 0 : index
    %10 = vector.load %arg4[%c0_6, %c0_7] : memref<16x4xbf16, #tpu.memory_space<vmem>>, vector<16x4xbf16>
    %11 = arith.truncf %9 : vector<4x256xf32> to vector<4x256xbf16>
    %cst_8 = arith.constant dense<0.000000e+00> : vector<16x256xf32>
    %12 = tpu.matmul %10, %11, %cst_8 {dimension_numbers = #tpu.dot_dimension_numbers<[1], [0], [0], [1], [0, 0, 1, 1], [], []>} : vector<16x4xbf16>, vector<4x256xbf16>, vector<16x256xf32> -> vector<16x256xf32>
    %c0_9 = arith.constant 0 : index
    %c0_10 = arith.constant 0 : index
    %13 = vector.load %arg5[%c0_9, %c0_10] : memref<16x1xf32, #tpu.memory_space<vmem>>, vector<16x1xf32>
    %14 = vector.broadcast %13 : vector<16x1xf32> to vector<16x256xf32>
    %15 = arith.mulf %12, %14 : vector<16x256xf32>
    %c0_11 = arith.constant 0 : index
    %c0_12 = arith.constant 0 : index
    %16 = vector.load %arg6[%c0_11, %c0_12] : memref<16x1xf32, #tpu.memory_space<vmem>>, vector<16x1xf32>
    %17 = vector.broadcast %16 : vector<16x1xf32> to vector<16x256xf32>
    %18 = arith.addf %15, %17 : vector<16x256xf32>
    %cst_13 = arith.constant 0.000000e+00 : f32
    %19 = vector.broadcast %cst_13 : f32 to vector<16x256xf32>
    %20 = arith.maximumf %18, %19 : vector<16x256xf32>
    %21 = arith.truncf %20 : vector<16x256xf32> to vector<16x256xbf16>
    %cst_14 = arith.constant 0.000000e+00 : bf16
    %22 = vector.broadcast %cst_14 : bf16 to vector<16x128xbf16>
    %c0_15 = arith.constant 0 : index
    %c0_16 = arith.constant 0 : index
    %23 = vector.load %arg9[%c0_15, %c0_16] : memref<16x512xbf16, #tpu.memory_space<vmem>>, vector<16x128xbf16>
    tpu.vector_store %arg9[%c0_15, %c0_16], %22 {strides = array<i32>} : memref<16x512xbf16, #tpu.memory_space<vmem>>, vector<16x128xbf16>,
    %c0_17 = arith.constant 0 : index
    %c384 = arith.constant 384 : index
    %24 = vector.load %arg9[%c0_17, %c384] : memref<16x512xbf16, #tpu.memory_space<vmem>>, vector<16x128xbf16>
    tpu.vector_store %arg9[%c0_17, %c384], %22 {strides = array<i32>} : memref<16x512xbf16, #tpu.memory_space<vmem>>, vector<16x128xbf16>,
    %c0_18 = arith.constant 0 : index
    %c128 = arith.constant 128 : index
    %25 = vector.load %arg9[%c0_18, %c128] : memref<16x512xbf16, #tpu.memory_space<vmem>>, vector<16x256xbf16>
    tpu.vector_store %arg9[%c0_18, %c128], %21 {strides = array<i32>} : memref<16x512xbf16, #tpu.memory_space<vmem>>, vector<16x256xbf16>,
    %26 = tpu.iota {dimensions = array<i32: 1>} : vector<1x256xi32>
    %c16_i32 = arith.constant 16 : i32
    %c0_i32 = arith.constant 0 : i32
    %27 = arith.cmpi eq, %c16_i32, %c0_i32 : i32
    %c1_i32 = arith.constant 1 : i32
    %28 = arith.select %27, %c1_i32, %c16_i32 : i32
    %29 = vector.broadcast %28 : i32 to vector<1x256xi32>
    %30 = arith.remsi %26, %29 : vector<1x256xi32>
    %c0_i32_19 = arith.constant 0 : i32
    %31 = vector.broadcast %c0_i32_19 : i32 to vector<1x256xi32>
    %32 = arith.cmpi ne, %30, %31 : vector<1x256xi32>
    %c0_i32_20 = arith.constant 0 : i32
    %33 = vector.broadcast %c0_i32_20 : i32 to vector<1x256xi32>
    %34 = arith.cmpi slt, %30, %33 : vector<1x256xi32>
    %c0_i32_21 = arith.constant 0 : i32
    %35 = arith.cmpi slt, %28, %c0_i32_21 : i32
    %36 = vector.broadcast %35 : i1 to vector<1x256xi1>
    %37 = vector.broadcast %36 : vector<1x256xi1> to vector<1x256xi1>
    %38 = arith.xori %34, %37 : vector<1x256xi1>
    %39 = arith.andi %38, %32 : vector<1x256xi1>
    %40 = vector.broadcast %28 : i32 to vector<1x256xi32>
    %41 = arith.addi %30, %40 : vector<1x256xi32>
    %42 = arith.select %39, %41, %30 : vector<1x256xi1>, vector<1x256xi32>
    %c0_22 = arith.constant 0 : index
    %c111 = arith.constant 111 : index
    %43 = vector.load %arg9[%c0_22, %c111] : memref<16x512xbf16, #tpu.memory_space<vmem>>, vector<16x256xbf16>
    %c-1_i32 = arith.constant -1 : i32
    %44 = vector.broadcast %c-1_i32 : i32 to vector<1x256xi32>
    %45 = arith.addi %42, %44 : vector<1x256xi32>
    %c0_i32_23 = arith.constant 0 : i32
    %46 = vector.broadcast %c0_i32_23 : i32 to vector<1x256xi32>
    %47 = arith.cmpi sge, %45, %46 : vector<1x256xi32>
    %c-1_i32_24 = arith.constant -1 : i32
    %48 = vector.broadcast %c-1_i32_24 : i32 to vector<1x256xi32>
    %49 = arith.addi %42, %48 : vector<1x256xi32>
    %c16_i32_25 = arith.constant 16 : i32
    %50 = vector.broadcast %c16_i32_25 : i32 to vector<1x256xi32>
    %51 = arith.cmpi slt, %49, %50 : vector<1x256xi32>
    %52 = arith.andi %47, %51 : vector<1x256xi1>
    %cst_26 = arith.constant 0.000000e+00 : bf16
    %53 = vector.broadcast %cst_26 : bf16 to vector<16x256xbf16>
    %54 = vector.shape_cast %52 : vector<1x256xi1> to vector<1x256xi1>
    %55 = vector.broadcast %54 : vector<1x256xi1> to vector<16x256xi1>
    %56 = arith.select %55, %43, %53 : vector<16x256xi1>, vector<16x256xbf16>
    %c0_27 = arith.constant 0 : index
    %c0_28 = arith.constant 0 : index
    %57 = vector.load %arg10[%c0_27, %c0_28] : memref<144x256xbf16, #tpu.memory_space<vmem>>, vector<16x256xbf16>
    tpu.vector_store %arg10[%c0_27, %c0_28], %56 {strides = array<i32>} : memref<144x256xbf16, #tpu.memory_space<vmem>>, vector<16x256xbf16>,
    %c0_29 = arith.constant 0 : index
    %c112 = arith.constant 112 : index
    %58 = vector.load %arg9[%c0_29, %c112] : memref<16x512xbf16, #tpu.memory_space<vmem>>, vector<16x256xbf16>
    %c16 = arith.constant 16 : index
    %c0_30 = arith.constant 0 : index
    %59 = vector.load %arg10[%c16, %c0_30] : memref<144x256xbf16, #tpu.memory_space<vmem>>, vector<16x256xbf16>
    tpu.vector_store %arg10[%c16, %c0_30], %58 {strides = array<i32>} : memref<144x256xbf16, #tpu.memory_space<vmem>>, vector<16x256xbf16>,
    %c0_31 = arith.constant 0 : index
    %c113 = arith.constant 113 : index
    %60 = vector.load %arg9[%c0_31, %c113] : memref<16x512xbf16, #tpu.memory_space<vmem>>, vector<16x256xbf16>
    %c1_i32_32 = arith.constant 1 : i32
    %61 = vector.broadcast %c1_i32_32 : i32 to vector<1x256xi32>
    %62 = arith.addi %42, %61 : vector<1x256xi32>
    %c0_i32_33 = arith.constant 0 : i32
    %63 = vector.broadcast %c0_i32_33 : i32 to vector<1x256xi32>
    %64 = arith.cmpi sge, %62, %63 : vector<1x256xi32>
    %c1_i32_34 = arith.constant 1 : i32
    %65 = vector.broadcast %c1_i32_34 : i32 to vector<1x256xi32>
    %66 = arith.addi %42, %65 : vector<1x256xi32>
    %c16_i32_35 = arith.constant 16 : i32
    %67 = vector.broadcast %c16_i32_35 : i32 to vector<1x256xi32>
    %68 = arith.cmpi slt, %66, %67 : vector<1x256xi32>
    %69 = arith.andi %64, %68 : vector<1x256xi1>
    %cst_36 = arith.constant 0.000000e+00 : bf16
    %70 = vector.broadcast %cst_36 : bf16 to vector<16x256xbf16>
    %71 = vector.shape_cast %69 : vector<1x256xi1> to vector<1x256xi1>
    %72 = vector.broadcast %71 : vector<1x256xi1> to vector<16x256xi1>
    %73 = arith.select %72, %60, %70 : vector<16x256xi1>, vector<16x256xbf16>
    %c32 = arith.constant 32 : index
    %c0_37 = arith.constant 0 : index
    %74 = vector.load %arg10[%c32, %c0_37] : memref<144x256xbf16, #tpu.memory_space<vmem>>, vector<16x256xbf16>
    tpu.vector_store %arg10[%c32, %c0_37], %73 {strides = array<i32>} : memref<144x256xbf16, #tpu.memory_space<vmem>>, vector<16x256xbf16>,
    %c0_38 = arith.constant 0 : index
    %c127 = arith.constant 127 : index
    %75 = vector.load %arg9[%c0_38, %c127] : memref<16x512xbf16, #tpu.memory_space<vmem>>, vector<16x256xbf16>
    %c-1_i32_39 = arith.constant -1 : i32
    %76 = vector.broadcast %c-1_i32_39 : i32 to vector<1x256xi32>
    %77 = arith.addi %42, %76 : vector<1x256xi32>
    %c0_i32_40 = arith.constant 0 : i32
    %78 = vector.broadcast %c0_i32_40 : i32 to vector<1x256xi32>
    %79 = arith.cmpi sge, %77, %78 : vector<1x256xi32>
    %c-1_i32_41 = arith.constant -1 : i32
    %80 = vector.broadcast %c-1_i32_41 : i32 to vector<1x256xi32>
    %81 = arith.addi %42, %80 : vector<1x256xi32>
    %c16_i32_42 = arith.constant 16 : i32
    %82 = vector.broadcast %c16_i32_42 : i32 to vector<1x256xi32>
    %83 = arith.cmpi slt, %81, %82 : vector<1x256xi32>
    %84 = arith.andi %79, %83 : vector<1x256xi1>
    %cst_43 = arith.constant 0.000000e+00 : bf16
    %85 = vector.broadcast %cst_43 : bf16 to vector<16x256xbf16>
    %86 = vector.shape_cast %84 : vector<1x256xi1> to vector<1x256xi1>
    %87 = vector.broadcast %86 : vector<1x256xi1> to vector<16x256xi1>
    %88 = arith.select %87, %75, %85 : vector<16x256xi1>, vector<16x256xbf16>
    %c48 = arith.constant 48 : index
    %c0_44 = arith.constant 0 : index
    %89 = vector.load %arg10[%c48, %c0_44] : memref<144x256xbf16, #tpu.memory_space<vmem>>, vector<16x256xbf16>
    tpu.vector_store %arg10[%c48, %c0_44], %88 {strides = array<i32>} : memref<144x256xbf16, #tpu.memory_space<vmem>>, vector<16x256xbf16>,
    %c0_45 = arith.constant 0 : index
    %c128_46 = arith.constant 128 : index
    %90 = vector.load %arg9[%c0_45, %c128_46] : memref<16x512xbf16, #tpu.memory_space<vmem>>, vector<16x256xbf16>
    %c64 = arith.constant 64 : index
    %c0_47 = arith.constant 0 : index
    %91 = vector.load %arg10[%c64, %c0_47] : memref<144x256xbf16, #tpu.memory_space<vmem>>, vector<16x256xbf16>
    tpu.vector_store %arg10[%c64, %c0_47], %90 {strides = array<i32>} : memref<144x256xbf16, #tpu.memory_space<vmem>>, vector<16x256xbf16>,
    %c0_48 = arith.constant 0 : index
    %c129 = arith.constant 129 : index
    %92 = vector.load %arg9[%c0_48, %c129] : memref<16x512xbf16, #tpu.memory_space<vmem>>, vector<16x256xbf16>
    %c1_i32_49 = arith.constant 1 : i32
    %93 = vector.broadcast %c1_i32_49 : i32 to vector<1x256xi32>
    %94 = arith.addi %42, %93 : vector<1x256xi32>
    %c0_i32_50 = arith.constant 0 : i32
    %95 = vector.broadcast %c0_i32_50 : i32 to vector<1x256xi32>
    %96 = arith.cmpi sge, %94, %95 : vector<1x256xi32>
    %c1_i32_51 = arith.constant 1 : i32
    %97 = vector.broadcast %c1_i32_51 : i32 to vector<1x256xi32>
    %98 = arith.addi %42, %97 : vector<1x256xi32>
    %c16_i32_52 = arith.constant 16 : i32
    %99 = vector.broadcast %c16_i32_52 : i32 to vector<1x256xi32>
    %100 = arith.cmpi slt, %98, %99 : vector<1x256xi32>
    %101 = arith.andi %96, %100 : vector<1x256xi1>
    %cst_53 = arith.constant 0.000000e+00 : bf16
    %102 = vector.broadcast %cst_53 : bf16 to vector<16x256xbf16>
    %103 = vector.shape_cast %101 : vector<1x256xi1> to vector<1x256xi1>
    %104 = vector.broadcast %103 : vector<1x256xi1> to vector<16x256xi1>
    %105 = arith.select %104, %92, %102 : vector<16x256xi1>, vector<16x256xbf16>
    %c80 = arith.constant 80 : index
    %c0_54 = arith.constant 0 : index
    %106 = vector.load %arg10[%c80, %c0_54] : memref<144x256xbf16, #tpu.memory_space<vmem>>, vector<16x256xbf16>
    tpu.vector_store %arg10[%c80, %c0_54], %105 {strides = array<i32>} : memref<144x256xbf16, #tpu.memory_space<vmem>>, vector<16x256xbf16>,
    %c0_55 = arith.constant 0 : index
    %c143 = arith.constant 143 : index
    %107 = vector.load %arg9[%c0_55, %c143] : memref<16x512xbf16, #tpu.memory_space<vmem>>, vector<16x256xbf16>
    %c-1_i32_56 = arith.constant -1 : i32
    %108 = vector.broadcast %c-1_i32_56 : i32 to vector<1x256xi32>
    %109 = arith.addi %42, %108 : vector<1x256xi32>
    %c0_i32_57 = arith.constant 0 : i32
    %110 = vector.broadcast %c0_i32_57 : i32 to vector<1x256xi32>
    %111 = arith.cmpi sge, %109, %110 : vector<1x256xi32>
    %c-1_i32_58 = arith.constant -1 : i32
    %112 = vector.broadcast %c-1_i32_58 : i32 to vector<1x256xi32>
    %113 = arith.addi %42, %112 : vector<1x256xi32>
    %c16_i32_59 = arith.constant 16 : i32
    %114 = vector.broadcast %c16_i32_59 : i32 to vector<1x256xi32>
    %115 = arith.cmpi slt, %113, %114 : vector<1x256xi32>
    %116 = arith.andi %111, %115 : vector<1x256xi1>
    %cst_60 = arith.constant 0.000000e+00 : bf16
    %117 = vector.broadcast %cst_60 : bf16 to vector<16x256xbf16>
    %118 = vector.shape_cast %116 : vector<1x256xi1> to vector<1x256xi1>
    %119 = vector.broadcast %118 : vector<1x256xi1> to vector<16x256xi1>
    %120 = arith.select %119, %107, %117 : vector<16x256xi1>, vector<16x256xbf16>
    %c96 = arith.constant 96 : index
    %c0_61 = arith.constant 0 : index
    %121 = vector.load %arg10[%c96, %c0_61] : memref<144x256xbf16, #tpu.memory_space<vmem>>, vector<16x256xbf16>
    tpu.vector_store %arg10[%c96, %c0_61], %120 {strides = array<i32>} : memref<144x256xbf16, #tpu.memory_space<vmem>>, vector<16x256xbf16>,
    %c0_62 = arith.constant 0 : index
    %c144 = arith.constant 144 : index
    %122 = vector.load %arg9[%c0_62, %c144] : memref<16x512xbf16, #tpu.memory_space<vmem>>, vector<16x256xbf16>
    %c112_63 = arith.constant 112 : index
    %c0_64 = arith.constant 0 : index
    %123 = vector.load %arg10[%c112_63, %c0_64] : memref<144x256xbf16, #tpu.memory_space<vmem>>, vector<16x256xbf16>
    tpu.vector_store %arg10[%c112_63, %c0_64], %122 {strides = array<i32>} : memref<144x256xbf16, #tpu.memory_space<vmem>>, vector<16x256xbf16>,
    %c0_65 = arith.constant 0 : index
    %c145 = arith.constant 145 : index
    %124 = vector.load %arg9[%c0_65, %c145] : memref<16x512xbf16, #tpu.memory_space<vmem>>, vector<16x256xbf16>
    %c1_i32_66 = arith.constant 1 : i32
    %125 = vector.broadcast %c1_i32_66 : i32 to vector<1x256xi32>
    %126 = arith.addi %42, %125 : vector<1x256xi32>
    %c0_i32_67 = arith.constant 0 : i32
    %127 = vector.broadcast %c0_i32_67 : i32 to vector<1x256xi32>
    %128 = arith.cmpi sge, %126, %127 : vector<1x256xi32>
    %c1_i32_68 = arith.constant 1 : i32
    %129 = vector.broadcast %c1_i32_68 : i32 to vector<1x256xi32>
    %130 = arith.addi %42, %129 : vector<1x256xi32>
    %c16_i32_69 = arith.constant 16 : i32
    %131 = vector.broadcast %c16_i32_69 : i32 to vector<1x256xi32>
    %132 = arith.cmpi slt, %130, %131 : vector<1x256xi32>
    %133 = arith.andi %128, %132 : vector<1x256xi1>
    %cst_70 = arith.constant 0.000000e+00 : bf16
    %134 = vector.broadcast %cst_70 : bf16 to vector<16x256xbf16>
    %135 = vector.shape_cast %133 : vector<1x256xi1> to vector<1x256xi1>
    %136 = vector.broadcast %135 : vector<1x256xi1> to vector<16x256xi1>
    %137 = arith.select %136, %124, %134 : vector<16x256xi1>, vector<16x256xbf16>
    %c128_71 = arith.constant 128 : index
    %c0_72 = arith.constant 0 : index
    %138 = vector.load %arg10[%c128_71, %c0_72] : memref<144x256xbf16, #tpu.memory_space<vmem>>, vector<16x256xbf16>
    tpu.vector_store %arg10[%c128_71, %c0_72], %137 {strides = array<i32>} : memref<144x256xbf16, #tpu.memory_space<vmem>>, vector<16x256xbf16>,
    %c0_73 = arith.constant 0 : index
    %c0_74 = arith.constant 0 : index
    %139 = vector.load %arg7[%c0_73, %c0_74] : memref<4x144xbf16, #tpu.memory_space<vmem>>, vector<4x144xbf16>
    %c0_75 = arith.constant 0 : index
    %c0_76 = arith.constant 0 : index
    %140 = vector.load %arg10[%c0_75, %c0_76] : memref<144x256xbf16, #tpu.memory_space<vmem>>, vector<144x256xbf16>
    %cst_77 = arith.constant dense<0.000000e+00> : vector<4x256xf32>
    %141 = tpu.matmul %139, %140, %cst_77 {dimension_numbers = #tpu.dot_dimension_numbers<[1], [0], [0], [1], [0, 0, 1, 1], [], []>} : vector<4x144xbf16>, vector<144x256xbf16>, vector<4x256xf32> -> vector<4x256xf32>
    %c0_78 = arith.constant 0 : index
    %c0_79 = arith.constant 0 : index
    %c0_80 = arith.constant 0 : index
    %142 = vector.load %arg8[%c0_78, %c0_79, %c0_80] : memref<1x4x256xf32, #tpu.memory_space<vmem>>, vector<1x4x256xf32>
    %143 = vector.shape_cast %142 : vector<1x4x256xf32> to vector<4x256xf32>
    %144 = vector.shape_cast %141 : vector<4x256xf32> to vector<1x4x256xf32>
    tpu.vector_store %arg8[%c0_78, %c0_79, %c0_80], %144 {strides = array<i32>} : memref<1x4x256xf32, #tpu.memory_space<vmem>>, vector<1x4x256xf32>,
    return
  }
  func.func @transform_0(%arg0: i32) -> (i32, i32, i32) {
    %c0_i32 = arith.constant 0 : i32
    %c0_i32_0 = arith.constant 0 : i32
    %c0_i32_1 = arith.constant 0 : i32
    return %arg0, %c0_i32, %c0_i32_0 : i32, i32, i32
  }
  func.func @transform_1(%arg0: i32) -> (i32, i32) {
    %c0_i32 = arith.constant 0 : i32
    %c0_i32_0 = arith.constant 0 : i32
    %c0_i32_1 = arith.constant 0 : i32
    return %c0_i32, %c0_i32_0 : i32, i32
  }
  func.func @transform_2(%arg0: i32) -> (i32, i32) {
    %c0_i32 = arith.constant 0 : i32
    %c0_i32_0 = arith.constant 0 : i32
    %c0_i32_1 = arith.constant 0 : i32
    return %c0_i32, %c0_i32_0 : i32, i32
  }
  func.func @transform_3(%arg0: i32) -> (i32, i32) {
    %c0_i32 = arith.constant 0 : i32
    %c0_i32_0 = arith.constant 0 : i32
    %c0_i32_1 = arith.constant 0 : i32
    return %c0_i32, %c0_i32_0 : i32, i32
  }
  func.func @transform_4(%arg0: i32) -> (i32, i32) {
    %c0_i32 = arith.constant 0 : i32
    %c0_i32_0 = arith.constant 0 : i32
    %c0_i32_1 = arith.constant 0 : i32
    return %c0_i32, %c0_i32_0 : i32, i32
  }
  func.func @transform_5(%arg0: i32) -> (i32, i32) {
    %c0_i32 = arith.constant 0 : i32
    %c0_i32_0 = arith.constant 0 : i32
    %c0_i32_1 = arith.constant 0 : i32
    return %c0_i32, %c0_i32_0 : i32, i32
  }
  func.func @transform_6(%arg0: i32) -> (i32, i32) {
    %c0_i32 = arith.constant 0 : i32
    %c0_i32_0 = arith.constant 0 : i32
    %c0_i32_1 = arith.constant 0 : i32
    return %c0_i32, %c0_i32_0 : i32, i32
  }
  func.func @transform_7(%arg0: i32) -> (i32, i32, i32) {
    %c0_i32 = arith.constant 0 : i32
    %c0_i32_0 = arith.constant 0 : i32
    %c0_i32_1 = arith.constant 0 : i32
    return %arg0, %c0_i32, %c0_i32_0 : i32, i32, i32
  }
}

</mosaic_0001>

<bundles_post_ra>
// kernel: _forward.1
= control target key start
LH: loop header
LB: loop body
LE: loop exit
PB: predicated region body
PF: predicated region fallthrough
CT: control target
= control target key end

     0   :  { %s944_s24 = smov 0   ;;  %s1090_s0 = inlined_call_operand.vmem [shape: f32[2,4,256], index: 0, kind: input, shape index: {}]   ;;  %s1091_s1 = inlined_call_operand.vmem [shape: f32[4,1], index: 1, kind: input, shape index: {}]   ;;  %s1092_s2 = inlined_call_operand.vmem [shape: f32[4,1], index: 2, kind: input, shape index: {}]   ;;  %s1093_s3 = inlined_call_operand.vmem [shape: bf16[16,4], index: 3, kind: input, shape index: {}]   ;;  %s1094_s4 = inlined_call_operand.vmem [shape: f32[16,1], index: 4, kind: input, shape index: {}]   ;;  %s1095_s5 = inlined_call_operand.vmem [shape: f32[16,1], index: 5, kind: input, shape index: {}]   ;;  %s1096_s6 = inlined_call_operand.vmem [shape: bf16[4,144], index: 6, kind: input, shape index: {}]   ;;  %s1097_s7 = inlined_call_operand.vmem [shape: f32[2,4,256], index: 7, kind: output, shape index: {}]  }
   0x1 LB: > { %s847_s25 = sadd.s32 4294967295, %s892_s24   ;;  %p851_p0 = scmp.ge.s32.totalorder %s892_s24, 1  ;;  %s892_s24 = sphi %s944_s24, %s17_s24  }
   0x2   : > { %p237_p1 = scmp.lt.s32.totalorder %s892_s24, 3 }
   0x4   : > { %p238_p2 = pnand %p851_p0, %p237_p1 }
   0x5   : > { %v283_v0 = vld [vmem:[%s1091_s1] sm:$0xf] (!%p238_p2)  ;;  %v894_v1 = vmov (!%p238_p2), 0   ;;  %v291_v4 = vlaneseq (!%p238_p2)  ;;  %v379_v9 = vld [vmem:[%s1094_s4 + $0x8] sm:$0xff] (!%p238_p2)  ;;  %s895_s15 = smov (!%p238_p2), 111   ;;  %s896_s16 = smov (!%p238_p2), 113  }
   0x6   : > { %241 = sbr.rel (%p238_p2) target bundleno = 750 (0x2ee), region = 48  ;;  %883 = vset.pattern.permute.xlu0 (!%p238_p2), %v894_v1  ;;  %367 = vmatprep.mubr.bf16.mxu0 (!%p238_p2), %v894_v1  ;;  %v297_v2 = vld [vmem:[%s1092_s2] sm:$0xf] (!%p238_p2)  ;;  %v395_v18 = vld [vmem:[%s1095_s5 + $0x8] sm:$0xff] (!%p238_p2)  ;;  %s897_s17 = smov (!%p238_p2), 127   ;;  %vm328_vm6 = vcmask (!%p238_p2), 1041408  }
   0x7   : > { %286 = vperm.xlu0 (!%p238_p2), %883, %v283_v0   ;;  %884 = vset.pattern.permute.xlu1 (!%p238_p2), %v894_v1  ;;  %v394_v3 = vld [vmem:[%s1095_s5] sm:$0xff] (!%p238_p2)  ;;  %v421_v5 = vand.u32 (!%p238_p2), 127, %v291_v4  ;;  %v292_v13 = vshrl.u32 (!%p238_p2), %v291_v4, 7  ;;  %s898_s18 = smov (!%p238_p2), 1   ;;  %s899_s19 = smov (!%p238_p2), 15   ;;  %vm324_vm7 = vcmask (!%p238_p2), 31744  }
   0x8   : > { %v378_v6 = vld [vmem:[%s1094_s4] sm:$0xff] (!%p238_p2)  ;;  %s900_s20 = smov (!%p238_p2), 17   ;;  %p269_p3 = scmp.lt.s32.totalorder (!%p238_p2), %s847_s25, 1  ;;  %v901_v25 = vmov (!%p238_p2), 839922192   ;;  %vm476_vm8 = vcmask (!%p238_p2), 908288  }
   0x9   : > { %v422_v7 = vadd.s32 (!%p238_p2), 128, %v421_v5  ;;  %v427_v8 = vand.u32 (!%p238_p2), 15, %v421_v5  ;;  %382 = vperm.xlu1 (!%p238_p2), %884, %v378_v6   ;;  %v470_v16 = vsub.s32 (!%p238_p2), 4, %v292_v13  ;;  %v466_v17 = vsub.s32 (!%p238_p2), 0, %v292_v13  ;;  %v885_v41 = vld [vmem:[%s1093_s3] sm:$0xff] (!%p238_p2)   ;;  %s902_s29 = smov (!%p238_p2), 16  }
   0xa   : > { %v289_v26 = vunpack.c.l.s4 (!%p238_p2), %v901_v25  ;;  %vm579_vm10 = vcmask (!%p238_p2), 1039360   ;;  %vm548_vm11 = vcmask (!%p238_p2), 924672   ;;  %s903_s9 = smov (!%p238_p2), 112  }
   0xb   : > { %300 = vperm.xlu0 (!%p238_p2), %883, %v297_v2   ;;  %v434_v10 = vand.u32 (!%p238_p2), 15, %v422_v7  ;;  %v450_v11 = vadd.s32 (!%p238_p2), 4294967295, %v427_v8  ;;  %v522_v12 = vadd.s32 (!%p238_p2), 1, %v427_v8 }
   0xc   : > { %v290_v27 = vunpack.c.0.s8 (!%p238_p2), %v289_v26 }
   0xd   : > { %v451_v14 = vadd.s32 4294967295, %v434_v10  ;;  %vm452_vm0 = vcmp.ge.s32.totalorder %v450_v11, 0  ;;  %v523_v15 = vadd.s32 1, %v434_v10  ;;  %387 = vperm.xlu1 %884, %v379_v9   ;;  %vm526_vm1 = vcmp.lt.s32.totalorder %v522_v12, 16  ;;  %s1099_s25 = smov (!%p269_p3, %s847_s25), 1 }
   0xe   : > { %s863_s21 = sshll.u32 %s1099_s25, 3  ;;  %v293_v28 = vsub.s32 %v290_v27, %v292_v13 }
   0xf   : > { %398 = vperm.xlu0 %883, %v394_v3   ;;  %vm453_vm2 = vcmp.ge.s32.totalorder %v451_v14, 0  ;;  %vm527_vm3 = vcmp.lt.s32.totalorder %v523_v15, 16  ;;  %s273_s26 = scalar_lea.vmem %s1090_s0, %s863_s21  ;;  %s278_s12 = scalar_lea.vmem %s1097_s7, %s863_s21 }
  0x10   : > { %vm462_vm4 = vmpackc.low %vm453_vm2, %vm452_vm0  ;;  %v282_v31 = vld [vmem:[%s273_s26] sm:$0xff]  ;;  %vm596_vm2 = vcmask 7168  }
  0x11   : > { %v463_v19 = vsel %vm462_vm4, 65537, %v894_v1  ;;  %vm534_vm5 = vmpackc.low %vm527_vm3, %vm526_vm1  ;;  %403 = vperm.xlu1 %884, %v395_v18   ;;  %vm565_vm3 = vcmask 121856  }
  0x12   : > { %v471_v20 = vrot.slane %v463_v19, %v470_v16  ;;  %v467_v21 = vrot.slane %v463_v19, %v466_v17  ;;  %v535_v22 = vsel %vm534_vm5, 65537, %v894_v1 }
  0x13   : > { %v539_v23 = vrot.slane %v535_v22, %v466_v17  ;;  %v543_v24 = vrot.slane %v535_v22, %v470_v16 }
  0x14   : > { %472 = vrot.lane.b32.xlu0 %v467_v21, %s895_s15 }
  0x15   : > { %474 = vrot.lane.b32.xlu1 %v471_v20, %s895_s15 }
  0x18   : > { %544 = vrot.lane.b32.xlu0 %v539_v23, %s896_s16 }
  0x19   : > { %546 = vrot.lane.b32.xlu1 %v543_v24, %s896_s16 }
  0x1c   : > { %575 = vrot.lane.b32.xlu0 %v467_v21, %s897_s17 }
  0x1d   : > { %577 = vrot.lane.b32.xlu1 %v471_v20, %s897_s17 }
  0x20   : > { %610 = vrot.lane.b32.xlu0 %v539_v23, %s898_s18 }
  0x21   : > { %612 = vrot.lane.b32.xlu1 %v543_v24, %s898_s18 }
  0x24   : > { %639 = vrot.lane.b32.xlu0 %v467_v21, %s899_s19 }
  0x25   : > { %641 = vrot.lane.b32.xlu1 %v471_v20, %s899_s19 }
  0x28   : > { %687 = vrot.lane.b32.xlu0 %v539_v23, %s900_s20 }
  0x29   : > { %689 = vrot.lane.b32.xlu1 %v543_v24, %s900_s20 }
  0x2c   : > { %487 = vrot.lane.b32.xlu0 %v894_v1, %s900_s20 }
  0x2d   : > { %506 = vrot.lane.b32.xlu1 %v894_v1, %s902_s29 }
  0x30   : > { %559 = vrot.lane.b32.xlu0 %v894_v1, %s899_s19 }
  0x86   : > { %v287_v29 = vpop.permute.xlu0 %286 }
  0x87   : > { %v294_v30 = vrot.slane %v287_v29, %v293_v28 }
  0x88   : > { %v383_v42 = vpop.permute.xlu1 %382 }
  0x89   : > { %v296_v33 = vmul.f32 %v294_v30, %v282_v31 }
  0x8a   : > { %v301_v32 = vpop.permute.xlu0 %300 }
  0x8b   : > { %v308_v34 = vrot.slane %v301_v32, %v293_v28  ;;  %v1050_v28 = vld.sshfl [vmem:[%s1096_s6] sm:$0x33 pattern:$0x76325410] }
  0x8c   : > { %v388_v43 = vpop.permute.xlu1 %387  ;;  %v740_v30 = vcombine.high %v1050_v28, %v1050_v28 }
  0x8d   : > { %v310_v35 = vadd.f32 %v308_v34, %v296_v33 }
  0x8e   : > { %v399_v45 = vpop.permute.xlu0 %398 }
  0x8f   : > { %v311_v36 = vmax.f32 %v310_v35, 0.0 }
  0x90   : > { %v404_v44 = vpop.permute.xlu1 %403 }
  0x91   : > { %v315_v37 = vcombine.high %v311_v36, %v311_v36  ;;  %v317_v38 = vpack.c.bf16 %v311_v36, %v311_v36 }
  0x92   : > { %v473_v47 = vpop.permute.xlu0 %472 }
  0x93   : > { %v318_v39 = vpack.c.bf16 %v315_v37, %v315_v37  ;;  %v330_v40 = vsel %vm328_vm6, %v317_v38, 0 }
  0x94   : > { %v475_v46 = vpop.permute.xlu1 %474 }
  0x95   : > { %857 = vmatprep.subr.msk.bf16.mxu0 %vm328_vm6, %v318_v39  ;;  %v477_v58 = vsel %vm476_vm8, %v473_v47, %v475_v46  ;;  %vm480_vm12 = vcmp.ne.s16.totalorder %v475_v46, 0 }
  0x96   : > { %336 = vmatpush1.bf16.msra.mxu0 %v330_v40  ;;  %v545_v60 = vpop.permute.xlu0 %544  ;;  %vm479_vm9 = vcmp.ne.s16.totalorder %v477_v58, 0 }
  0x98   : > { %v547_v59 = vpop.permute.xlu1 %546 }
  0x99   : > { %858 = vmatmul.mubr.msk.bf16.vlgmr.msra.gmra.mrb[0].mxu0 %vm324_vm7, %v885_v41  ;;  %v549_v10 = vsel %vm548_vm11, %v545_v60, %v547_v59  ;;  %vm552_vm15 = vcmp.ne.s16.totalorder %v547_v59, 0  ;;  %vm493_vm7 = vcmask 138240  }
  0x9a   : > { %v576_v7 = vpop.permute.xlu0 %575  ;;  %vm551_vm14 = vcmp.ne.s16.totalorder %v549_v10, 0 }
  0x9c   : > { %v578_v6 = vpop.permute.xlu1 %577 }
  0x9d   : > { %v580_v9 = vsel %vm579_vm10, %v576_v7, %v578_v6  ;;  %vm583_vm1 = vcmp.ne.s16.totalorder %v578_v6, 0 }
  0x9e   : > { %vm582_vm13 = vcmp.ne.s16.totalorder %v580_v9, 0  ;;  %v611_v13 = vpop.permute.xlu0 %610 }
  0x9f   : > { %vm615_vm0 = vcmp.ne.s16.totalorder %v611_v13, 0 }
  0xa0   : > { %v613_v17 = vpop.permute.xlu1 %612 }
  0xa1   : > { %v614_v19 = vsel %vm596_vm2, %v611_v13, %v613_v17 }
  0xa2   : > { %v640_v20 = vpop.permute.xlu0 %639  ;;  %vm616_vm5 = vcmp.ne.s16.totalorder %v614_v19, 0 }
  0xa3   : > { %vm644_vm4 = vcmp.ne.s16.totalorder %v640_v20, 0 }
  0xa4   : > { %v642_v21 = vpop.permute.xlu1 %641 }
  0xa5   : > { %v643_v22 = vsel %vm565_vm3, %v640_v20, %v642_v21 }
  0xa6   : > { %vm645_vm6 = vcmp.ne.s16.totalorder %v643_v22, 0  ;;  %v688_v26 = vpop.permute.xlu0 %687 }
  0xa8   : > { %v690_v25 = vpop.permute.xlu1 %689 }
  0xa9   : > { %v691_v29 = vsel %vm493_vm7, %v688_v26, %v690_v25 }
  0xaa   : > { %v488_v33 = vpop.permute.xlu0 %487 }
  0xac   : > { %v507_v34 = vpop.permute.xlu1 %506 }
  0xae   : > { %v560_v35 = vpop.permute.xlu0 %559 }
 0x16c   : > { %v369_v48 = vpop.f32.mrb[0].mxu0 }
 0x16d   : > { %v390_v49 = vmul.f32 %v383_v42, %v369_v48  ;;  %v371_v50 = vpop.f32.mrb[1].mxu0 }
 0x16e   : > { %v391_v51 = vmul.f32 %v383_v42, %v371_v50  ;;  %v373_v52 = vpop.f32.mrb[2].mxu0 }
 0x16f   : > { %v406_v53 = vadd.f32 %v399_v45, %v390_v49  ;;  %v392_v54 = vmul.f32 %v388_v43, %v373_v52  ;;  %v375_v55 = vpop.f32.mrb[3].mxu0 }
 0x170   : > { %v407_v56 = vadd.f32 %v399_v45, %v391_v51  ;;  %v393_v57 = vmul.f32 %v388_v43, %v375_v55 }
 0x171   : > { %v408_v61 = vadd.f32 %v404_v44, %v392_v54  ;;  %v410_v63 = vmax.f32 %v406_v53, 0.0 }
 0x172   : > { %v409_v62 = vadd.f32 %v404_v44, %v393_v57  ;;  %v411_v2 = vmax.f32 %v407_v56, 0.0 }
 0x173   : > { %v412_v0 = vmax.f32 %v408_v61, 0.0 }
 0x174   : > { %v413_v3 = vmax.f32 %v409_v62, 0.0 }
 0x175   : > { %v1009_v4 = vpack.c.bf16 %v412_v0, %v410_v63 }
 0x176   : > { %v1011_v5 = vpack.c.bf16 %v413_v3, %v411_v2 }
 0x177   : > { %508 = vrot.lane.b32.xlu1 %v1009_v4, %s902_s29  ;;  %v482_v8 = vsel %vm479_vm9, %v1009_v4, 0  ;;  %v585_v12 = vsel %vm582_vm13, %v1009_v4, 0  ;;  %v554_v14 = vsel %vm551_vm14, %v1009_v4, 0  ;;  %v618_v16 = vsel %vm615_vm0, %v1009_v4, 0 }
 0x178   : > { %489 = vrot.lane.b32.xlu0 %v482_v8, %s900_s20  ;;  %v483_v11 = vsel %vm480_vm12, %v1011_v5, 0  ;;  %v555_v15 = vsel %vm552_vm15, %v1011_v5, 0  ;;  %v586_v18 = vsel %vm583_vm1, %v1011_v5, 0  ;;  %v647_v23 = vsel %vm644_vm4, %v1009_v4, 0 }
 0x179   : > { %v619_v24 = vsel %vm616_vm5, %v1011_v5, 0  ;;  %v648_v27 = vsel %vm645_vm6, %v1011_v5, 0  ;;  %vm512_vm9 = vcmask 130048   ;;  %vm693_vm12 = vcmp.ne.s16.totalorder %v691_v29, 0 }
 0x17a   : > { %860 = vmatprep.mubr.msk.bf16.mxu1 %vm512_vm9, %v740_v30  ;;  %v696_v31 = vsel %vm693_vm12, %v1011_v5, 0  ;;  %vm692_vm13 = vcmp.ne.s16.totalorder %v688_v26, 0  ;;  %vm677_vm14 = vcmask 916480  }
 0x17b   : > { %491 = vrot.lane.b32.xlu1 %v483_v11, %s900_s20  ;;  %v695_v32 = vsel %vm692_vm13, %v1009_v4, 0 }
 0x17c   : > { %510 = vrot.lane.b32.xlu0 %v1011_v5, %s902_s29 }
 0x17f   : > { %592 = vrot.lane.b32.xlu1 %v585_v12, %s898_s18 }
 0x180   : > { %561 = vrot.lane.b32.xlu0 %v554_v14, %s899_s19 }
 0x183   : > { %563 = vrot.lane.b32.xlu1 %v555_v15, %s899_s19 }
 0x184   : > { %624 = vrot.lane.b32.xlu0 %v618_v16, %s897_s17 }
 0x187   : > { %590 = vrot.lane.b32.xlu1 %v894_v1, %s898_s18 }
 0x188   : > { %594 = vrot.lane.b32.xlu0 %v586_v18, %s898_s18 }
 0x18b   : > { %628 = vrot.lane.b32.xlu1 %v894_v1, %s897_s17 }
 0x18c   : > { %657 = vrot.lane.b32.xlu0 %v894_v1, %s896_s16 }
 0x18f   : > { %653 = vrot.lane.b32.xlu1 %v647_v23, %s896_s16 }
 0x190   : > { %626 = vrot.lane.b32.xlu0 %v619_v24, %s897_s17 }
 0x193   : > { %655 = vrot.lane.b32.xlu1 %v648_v27, %s896_s16 }
 0x194   : > { %673 = vrot.lane.b32.xlu0 %v1011_v5, %s903_s9 }
 0x197   : > { %675 = vrot.lane.b32.xlu1 %v894_v1, %s903_s9 }
 0x198   : > { %671 = vrot.lane.b32.xlu0 %v1009_v4, %s903_s9 }
 0x19b   : > { %703 = vrot.lane.b32.xlu1 %v696_v31, %s895_s15 }
 0x19c   : > { %705 = vrot.lane.b32.xlu0 %v894_v1, %s895_s15 }
 0x19f   : > { %701 = vrot.lane.b32.xlu1 %v695_v32, %s895_s15 }
 0x1e9   : > { %v509_v36 = vpop.permute.xlu1 %508 }
 0x1ea   : > { %v490_v37 = vpop.permute.xlu0 %489  ;;  %v513_v44 = vsel %vm512_vm9, %v507_v34, %v509_v36 }
 0x1eb   : > { %v494_v41 = vsel %vm493_vm7, %v488_v33, %v490_v37 }
 0x1ed   : > { %v492_v38 = vpop.permute.xlu1 %491 }
 0x1ee   : > { %v511_v39 = vpop.permute.xlu0 %510  ;;  %v495_v40 = vsel %vm493_vm7, %v490_v37, %v492_v38 }
 0x1ef   : > { %746 = vmatprep.subr.bf16.mxu1 %v495_v40  ;;  %v514_v42 = vsel %vm512_vm9, %v509_v36, %v511_v39 }
 0x1f0   : > { %747 = vmatpush1.bf16.msra.mxu1 %v494_v41 }
 0x1f1   : > { %748 = vmatprep.subr.bf16.mxu1 %v514_v42  ;;  %v593_v1 = vpop.permute.xlu1 %592 }
 0x1f2   : > { %v562_v43 = vpop.permute.xlu0 %561 }
 0x1f3   : > { %v566_v48 = vsel %vm565_vm3, %v560_v35, %v562_v43 }
 0x1f4   : > { %749 = vmatpush1.bf16.msra.mxu1 %v513_v44 }
 0x1f5   : > { %v564_v45 = vpop.permute.xlu1 %563 }
 0x1f6   : > { %v625_v46 = vpop.permute.xlu0 %624  ;;  %v567_v47 = vsel %vm565_vm3, %v562_v43, %v564_v45 }
 0x1f7   : > { %750 = vmatprep.subr.bf16.mxu1 %v567_v47 }
 0x1f8   : > { %751 = vmatpush1.bf16.msra.mxu1 %v566_v48 }
 0x1f9   : > { %v591_v49 = vpop.permute.xlu1 %590 }
 0x1fa   : > { %v595_v50 = vpop.permute.xlu0 %594  ;;  %v597_v52 = vsel %vm596_vm2, %v591_v49, %v593_v1 }
 0x1fb   : > { %v598_v51 = vsel %vm596_vm2, %v593_v1, %v595_v50 }
 0x1fc   : > { %752 = vmatprep.subr.bf16.mxu1 %v598_v51 }
 0x1fd   : > { %753 = vmatpush1.bf16.msra.mxu1 %v597_v52  ;;  %v629_v53 = vpop.permute.xlu1 %628 }
 0x1fe   : > { %v658_v54 = vpop.permute.xlu0 %657  ;;  %754 = vmatprep.subr.bf16.mxu1 %v1011_v5 }
 0x201   : > { %755 = vmatpush1.bf16.msra.mxu1 %v1009_v4  ;;  %v654_v55 = vpop.permute.xlu1 %653 }
 0x202   : > { %v627_v56 = vpop.permute.xlu0 %626 }
 0x203   : > { %v631_v57 = vsel %vm579_vm10, %v627_v56, %v629_v53  ;;  %v630_v58 = vsel %vm579_vm10, %v625_v46, %v627_v56 }
 0x204   : > { %756 = vmatprep.subr.bf16.mxu1 %v631_v57 }
 0x205   : > { %757 = vmatpush1.bf16.msra.mxu1 %v630_v58  ;;  %v656_v59 = vpop.permute.xlu1 %655 }
 0x206   : > { %v674_v60 = vpop.permute.xlu0 %673  ;;  %v660_v61 = vsel %vm548_vm11, %v656_v59, %v658_v54  ;;  %v659_v62 = vsel %vm548_vm11, %v654_v55, %v656_v59 }
 0x207   : > { %758 = vmatprep.subr.bf16.mxu1 %v660_v61 }
 0x209   : > { %759 = vmatpush1.bf16.msra.mxu1 %v659_v62  ;;  %v676_v63 = vpop.permute.xlu1 %675 }
 0x20a   : > { %v672_v0 = vpop.permute.xlu0 %671  ;;  %v679_v2 = vsel %vm677_vm14, %v674_v60, %v676_v63 }
 0x20b   : > { %760 = vmatprep.subr.bf16.mxu1 %v679_v2  ;;  %v678_v3 = vsel %vm677_vm14, %v672_v0, %v674_v60 }
 0x20d   : > { %761 = vmatpush1.bf16.msra.mxu1 %v678_v3  ;;  %v704_v4 = vpop.permute.xlu1 %703 }
 0x20e   : > { %v706_v5 = vpop.permute.xlu0 %705 }
 0x20f   : > { %v708_v6 = vsel %vm476_vm8, %v704_v4, %v706_v5 }
 0x210   : > { %762 = vmatprep.subr.bf16.mxu1 %v708_v6 }
 0x211   : > { %v702_v7 = vpop.permute.xlu1 %701 }
 0x212   : > { %v707_v8 = vsel %vm476_vm8, %v702_v7, %v704_v4 }
 0x213   : > { %763 = vmatpush1.bf16.msra.mxu1 %v707_v8 }
 0x216   : > { %779 = vmatmul.mubr.bf16.vlgmr.msra.gmra.mrb[0].mxu1 %v1050_v28 }
 0x2e9   : > { %v780_v9 = vpop.f32.mrb[0].mxu1 }
 0x2ea   : > { %v782_v10 = vpop.f32.mrb[1].mxu1 }
 0x2eb   : > { %v789_v11 = vcombine.low %v780_v9, %v782_v10  ;;  %v784_v12 = vpop.f32.mrb[2].mxu1 }
 0x2ec   : > { %v785_v13 = vpop.f32.mrb[3].mxu1 }
 0x2ed   : > { %791 = vst [vmem:[%s278_s12] sm:$0xff] %v789_v11 }
 0x2ee PF: > { %s17_s24 = sadd.s32 1, %s892_s24  }
 0x2ef   : > { %p14_p4 = scmp.ge.s32.totalorder %s17_s24, 4  }
 0x2f1   :  { %16 = sbr.rel (!%p14_p4) target bundleno = 1 (0x1), region = 78 }

</bundles_post_ra>
